<compile_context>
chip_gen: v6e
topology: v6e:2x2x1
jax: 0.10.0
libtpu: 0.0.40
codegen_flags: <defaults>
</compile_context>

<pallas_src>
import functools

import jax
import jax.numpy as jnp
from jax import lax
from jax.experimental import pallas as pl
from jax.experimental.pallas import tpu as pltpu
from jax.scipy.linalg import block_diag

_LN_EPS = 1e-5


def _mhsa_kernel(num_heads, dh, dhid, matmul_dtype,
                 x_ref, w_ref, pvec_ref, m_ref, o_ref):
    # x_ref: (L, C); w_ref: (C, HP); pvec_ref: (3, HP) = bias|gamma|beta;
    # m_ref: (HP, HP) block-diag averaging matrix; o_ref: (L, C).
    # Column layout along HP: [K_0..K_{H-1} | Q_0..Q_{H-1} | V_0..V_{H-1}].
    hd = num_heads * dhid                         # width of the K (and Q) slab
    x = x_ref[...].astype(jnp.float32)            # (L, C)
    mm = lambda a: a.astype(matmul_dtype)         # MXU-operand cast (bf16 by default)

    pvec = pvec_ref[...]                          # (3, HP) f32
    bias, gamma, beta = pvec[0:1, :], pvec[1:2, :], pvec[2:3, :]

    # (1) All heads' K/Q/V projections as ONE block-diagonal MXU matmul.
    y = jnp.dot(mm(x), w_ref[...],
                preferred_element_type=jnp.float32) + bias          # (L, HP) f32

    # (2) Per-segment LayerNorm, vectorized over all heads & projections.
    #     Row reductions run on the MXU (block-diag averaging matrix) so the
    #     XLU stays free; var = E[y^2] - E[y]^2 shares the reduction pass.
    m_avg = m_ref[...]                                              # (HP, HP) f32
    mean = jnp.dot(y, m_avg, preferred_element_type=jnp.float32)
    mean_sq = jnp.dot(y * y, m_avg, preferred_element_type=jnp.float32)
    var = jnp.maximum(mean_sq - mean * mean, 0.0)
    ln = (y - mean) * lax.rsqrt(var + _LN_EPS) * gamma + beta       # (L, HP) f32

    # (3) Per-head attention.  NOTE: scores are un-scaled (no 1/sqrt(d)) and
    #     softmax is over the *query* index -- this matches the module.
    # TODO(synk): at large L, move this loop into the grid (head axis
    # "parallel") or accumulate into VMEM scratch to bound live ranges.
    head_outs = []
    for h in range(num_heads):                                      # static unroll
        k = ln[:, h * dhid:(h + 1) * dhid]                          # (L, Dhid)
        q = ln[:, hd + h * dhid: hd + (h + 1) * dhid]               # (L, Dhid)
        v = ln[:, 2 * hd + h * dh: 2 * hd + (h + 1) * dh]           # (L, Dh)

        # Contract last axes directly (k @ q^T) -- no explicit transpose.
        s = lax.dot_general(mm(k), mm(q), (((1,), (1,)), ((), ())),
                            preferred_element_type=jnp.float32)     # (L, L)
        s = s - jnp.max(s, axis=-1, keepdims=True)
        p = jnp.exp(s)
        denom = jnp.sum(p, axis=-1, keepdims=True)
        pv = jnp.dot(mm(p), mm(v), preferred_element_type=jnp.float32)  # (L, Dh)
        # Fold the softmax normalization onto the small (L, Dh) result with an
        # exact division (correctness review: no approx reciprocal).
        head_outs.append(pv / denom)

    # (4) Skip connection added once on the full slab; single full-width store.
    o_ref[...] = (jnp.concatenate(head_outs, axis=-1) + x).astype(o_ref.dtype)


def multi_head_self_attention(x, params, num_heads, *, matmul_dtype=jnp.bfloat16):
    B, L, C = x.shape
    assert C % num_heads == 0
    H = num_heads
    Dh = C // H
    (wk, bk, gk, betak, wq, bq, gq, betaq, wv, bv, gv, betav) = params
    Dhid = wk.shape[-1]
    HP = H * (2 * Dhid + Dh)

    # Trace-time fusion: one block-diagonal weight for all H Linear layers of
    # K, Q and V -> a single (L, C) x (C, HP) matmul inside the kernel.
    w_bd = jnp.concatenate(
        [block_diag(*[wk[h] for h in range(H)]),     # (C, H*Dhid)
         block_diag(*[wq[h] for h in range(H)]),     # (C, H*Dhid)
         block_diag(*[wv[h] for h in range(H)])],    # (C, H*Dh)
        axis=1).astype(matmul_dtype)                 # (C, HP)

    def flat(a):  # (H, 1, D) -> (1, H*D), head-major (matches block-diag columns)
        return a.reshape(1, -1)

    # bias | gamma | beta merged into one (3, HP) array -> one DMA, one tile.
    pvec = jnp.concatenate([
        jnp.concatenate([flat(bk), flat(bq), flat(bv)], axis=1),
        jnp.concatenate([flat(gk), flat(gq), flat(gv)], axis=1),
        jnp.concatenate([flat(betak), flat(betaq), flat(betav)], axis=1),
    ], axis=0).astype(jnp.float32)                   # (3, HP)

    # Block-diagonal averaging matrix: (y @ m_avg)[:, j] = mean of y over the
    # LayerNorm segment containing column j  ->  LN reductions on the MXU.
    segs = [Dhid] * H + [Dhid] * H + [Dh] * H
    m_avg = block_diag(*[jnp.full((s, s), 1.0 / s, jnp.float32) for s in segs])  # (HP, HP)

    kernel = functools.partial(_mhsa_kernel, H, Dh, Dhid, matmul_dtype)

    # Natural (B, L, C) HBM layout, one batch row per grid step (B=2 gives two
    # "parallel" steps -> both v7x TensorCores busy; v5e/v6e single-TC no-op).
    out = pl.pallas_call(
        kernel,
        out_shape=jax.ShapeDtypeStruct((B, L, C), x.dtype),
        grid_spec=pltpu.PrefetchScalarGridSpec(
            num_scalar_prefetch=0,
            grid=(B,),
            in_specs=[
                pl.BlockSpec((None, L, C), lambda b: (b, 0, 0)),   # x
                pl.BlockSpec((C, HP), lambda b: (0, 0)),           # block-diag W
                pl.BlockSpec((3, HP), lambda b: (0, 0)),           # bias|gamma|beta
                pl.BlockSpec((HP, HP), lambda b: (0, 0)),          # LN averaging matrix
            ],
            out_specs=pl.BlockSpec((None, L, C), lambda b: (b, 0, 0)),
        ),
        compiler_params=pltpu.CompilerParams(
            dimension_semantics=("parallel",),
            vmem_limit_bytes=32 * 1024 * 1024,
        ),
    )(x, w_bd, pvec, m_avg)
    return out


def init_params(key, num_heads, head_in, hidden):
    """Deterministic synthetic weights: per-head Linear + LayerNorm params."""
    ks = jax.random.split(key, 6)

    def linear(kw, kb, d_in, d_out):
        w = jax.random.normal(kw, (num_heads, d_in, d_out), jnp.float32) / jnp.sqrt(d_in)
        b = 0.1 * jax.random.normal(kb, (num_heads, 1, d_out), jnp.float32)
        gamma = jnp.ones((num_heads, 1, d_out), jnp.float32)
        beta = jnp.zeros((num_heads, 1, d_out), jnp.float32)
        return w, b, gamma, beta

    wk, bk, gk, betak = linear(ks[0], ks[1], head_in, hidden)
    wq, bq, gq, betaq = linear(ks[2], ks[3], head_in, hidden)
    wv, bv, gv, betav = linear(ks[4], ks[5], head_in, head_in)
    return (wk, bk, gk, betak, wq, bq, gq, betaq, wv, bv, gv, betav)


def _reference(x, params, num_heads):
    """Pure-JAX replica of the PyTorch forward for verification."""
    B, L, C = x.shape
    Dh = C // num_heads
    (wk, bk, gk, betak, wq, bq, gq, betaq, wv, bv, gv, betav) = params

    def proj(xc, w, b, g, be, h):
        y = jnp.einsum('blc,cd->bld', xc, w[h]) + b[h]
        mu = y.mean(-1, keepdims=True)
        var = ((y - mu) ** 2).mean(-1, keepdims=True)
        return (y - mu) / jnp.sqrt(var + _LN_EPS) * g[h] + be[h]

    outs = []
    for h in range(num_heads):
        xc = x[..., h * Dh:(h + 1) * Dh]
        k = proj(xc, wk, bk, gk, betak, h)
        q = proj(xc, wq, bq, gq, betaq, h)
        v = proj(xc, wv, bv, gv, betav, h)
        s = jnp.einsum('blc,bLc->blL', k, q)
        p = jax.nn.softmax(s, axis=-1)
        outs.append(jnp.einsum('blL,bLc->blc', p, v) + xc)
    return jnp.concatenate(outs, axis=-1)


if __name__ == "__main__":
    B, L, C = 2, 8, 32
    NUM_HEADS = 4
    HIDDEN = 16
    HEAD_IN = C // NUM_HEADS

    key = jax.random.PRNGKey(0)
    kx, kp = jax.random.split(key)
    x = jax.random.normal(kx, (B, L, C), jnp.float32)
    params = init_params(kp, NUM_HEADS, HEAD_IN, HIDDEN)

    ref = _reference(x, params, NUM_HEADS)

    # Default path: bf16 MXU operands, f32 accumulation / LN / softmax.
    out = jax.block_until_ready(multi_head_self_attention(x, params, NUM_HEADS))
    assert out.shape == (B, L, C)
    rel_err = float(jnp.linalg.norm(out - ref) / jnp.linalg.norm(ref))
    assert rel_err < 5e-2, f"bf16-MXU path relative error too large: {rel_err}"

    # f32 MXU path: tight element-wise parity with the module semantics
    # (exact softmax division, no approx reciprocal).
    out_f32 = jax.block_until_ready(
        multi_head_self_attention(x, params, NUM_HEADS, matmul_dtype=jnp.float32))
    assert jnp.allclose(out_f32, ref, atol=1e-3, rtol=1e-3), "f32 path mismatch vs reference"

    print("KERNEL_OK")
</pallas_src>

<mosaic_0001>
module attributes {stable_mosaic.version = 11 : i64} {
  func.func @_mhsa_kernel(%arg0: i32, %arg1: memref<1x8x32xf32, #tpu.memory_space<vmem>>, %arg2: memref<32x160xbf16, #tpu.memory_space<vmem>>, %arg3: memref<3x160xf32, #tpu.memory_space<vmem>>, %arg4: memref<160x160xf32, #tpu.memory_space<vmem>>, %arg5: memref<1x8x32xf32, #tpu.memory_space<vmem>>) attributes {dimension_semantics = [#tpu.dimension_semantics<parallel>], iteration_bounds = array<i64: 2>, scalar_prefetch = 0 : i64, scratch_operands = 0 : i64, tpu.core_type = #tpu.core_type<tc>, window_params = [{transform_indices = @transform_0, window_bounds = array<i64: 1, 8, 32>}, {pipeline_mode = #tpu.pipeline_mode<synchronous>, transform_indices = @transform_1, window_bounds = array<i64: 32, 160>}, {pipeline_mode = #tpu.pipeline_mode<synchronous>, transform_indices = @transform_2, window_bounds = array<i64: 3, 160>}, {pipeline_mode = #tpu.pipeline_mode<synchronous>, transform_indices = @transform_3, window_bounds = array<i64: 160, 160>}, {transform_indices = @transform_4, window_bounds = array<i64: 1, 8, 32>}]} {
    %c0 = arith.constant 0 : index
    %c0_0 = arith.constant 0 : index
    %c0_1 = arith.constant 0 : index
    %0 = vector.load %arg1[%c0, %c0_0, %c0_1] : memref<1x8x32xf32, #tpu.memory_space<vmem>>, vector<1x8x32xf32>
    %1 = vector.shape_cast %0 : vector<1x8x32xf32> to vector<8x32xf32>
    %c0_2 = arith.constant 0 : index
    %c0_3 = arith.constant 0 : index
    %2 = vector.load %arg3[%c0_2, %c0_3] : memref<3x160xf32, #tpu.memory_space<vmem>>, vector<3x160xf32>
    %3 = vector.extract_strided_slice %2 {offsets = [0, 0], sizes = [1, 160], strides = [1, 1]} : vector<3x160xf32> to vector<1x160xf32>
    %4 = vector.extract_strided_slice %2 {offsets = [1, 0], sizes = [1, 160], strides = [1, 1]} : vector<3x160xf32> to vector<1x160xf32>
    %5 = vector.extract_strided_slice %2 {offsets = [2, 0], sizes = [1, 160], strides = [1, 1]} : vector<3x160xf32> to vector<1x160xf32>
    %6 = arith.truncf %1 : vector<8x32xf32> to vector<8x32xbf16>
    %c0_4 = arith.constant 0 : index
    %c0_5 = arith.constant 0 : index
    %7 = vector.load %arg2[%c0_4, %c0_5] : memref<32x160xbf16, #tpu.memory_space<vmem>>, vector<32x160xbf16>
    %cst = arith.constant dense<0.000000e+00> : vector<8x160xf32>
    %8 = tpu.matmul %6, %7, %cst {dimension_numbers = #tpu.dot_dimension_numbers<[1], [0], [0], [1], [0, 0, 1, 1], [], []>} : vector<8x32xbf16>, vector<32x160xbf16>, vector<8x160xf32> -> vector<8x160xf32>
    %9 = vector.broadcast %3 : vector<1x160xf32> to vector<8x160xf32>
    %10 = arith.addf %8, %9 : vector<8x160xf32>
    %c0_6 = arith.constant 0 : index
    %c0_7 = arith.constant 0 : index
    %11 = vector.load %arg4[%c0_6, %c0_7] : memref<160x160xf32, #tpu.memory_space<vmem>>, vector<160x160xf32>
    %cst_8 = arith.constant dense<0.000000e+00> : vector<8x160xf32>
    %12 = tpu.matmul %10, %11, %cst_8 {dimension_numbers = #tpu.dot_dimension_numbers<[1], [0], [0], [1], [0, 0, 1, 1], [], []>} : vector<8x160xf32>, vector<160x160xf32>, vector<8x160xf32> -> vector<8x160xf32>
    %13 = arith.mulf %10, %10 : vector<8x160xf32>
    %cst_9 = arith.constant dense<0.000000e+00> : vector<8x160xf32>
    %14 = tpu.matmul %13, %11, %cst_9 {dimension_numbers = #tpu.dot_dimension_numbers<[1], [0], [0], [1], [0, 0, 1, 1], [], []>} : vector<8x160xf32>, vector<160x160xf32>, vector<8x160xf32> -> vector<8x160xf32>
    %15 = arith.mulf %12, %12 : vector<8x160xf32>
    %16 = arith.subf %14, %15 : vector<8x160xf32>
    %cst_10 = arith.constant 0.000000e+00 : f32
    %17 = vector.broadcast %cst_10 : f32 to vector<8x160xf32>
    %18 = arith.maximumf %16, %17 : vector<8x160xf32>
    %19 = arith.subf %10, %12 : vector<8x160xf32>
    %cst_11 = arith.constant 9.99999974E-6 : f32
    %20 = vector.broadcast %cst_11 : f32 to vector<8x160xf32>
    %21 = arith.addf %18, %20 : vector<8x160xf32>
    %22 = math.rsqrt %21 : vector<8x160xf32>
    %23 = arith.mulf %19, %22 : vector<8x160xf32>
    %24 = vector.broadcast %4 : vector<1x160xf32> to vector<8x160xf32>
    %25 = arith.mulf %23, %24 : vector<8x160xf32>
    %26 = vector.broadcast %5 : vector<1x160xf32> to vector<8x160xf32>
    %27 = arith.addf %25, %26 : vector<8x160xf32>
    %28 = vector.extract_strided_slice %27 {offsets = [0, 0], sizes = [8, 16], strides = [1, 1]} : vector<8x160xf32> to vector<8x16xf32>
    %29 = vector.extract_strided_slice %27 {offsets = [0, 64], sizes = [8, 16], strides = [1, 1]} : vector<8x160xf32> to vector<8x16xf32>
    %30 = vector.extract_strided_slice %27 {offsets = [0, 128], sizes = [8, 8], strides = [1, 1]} : vector<8x160xf32> to vector<8x8xf32>
    %31 = arith.truncf %28 : vector<8x16xf32> to vector<8x16xbf16>
    %32 = arith.truncf %29 : vector<8x16xf32> to vector<8x16xbf16>
    %cst_12 = arith.constant dense<0.000000e+00> : vector<8x8xf32>
    %33 = tpu.matmul %31, %32, %cst_12 {dimension_numbers = #tpu.dot_dimension_numbers<[1], [1], [0], [0], [0, 0, 1, 0], [], []>} : vector<8x16xbf16>, vector<8x16xbf16>, vector<8x8xf32> -> vector<8x8xf32>
    %cst_13 = arith.constant dense<0xFF800000> : vector<8xf32>
    %34 = vector.multi_reduction <maximumf>, %33, %cst_13 [1] : vector<8x8xf32> to vector<8xf32>
    %35 = vector.shape_cast %34 : vector<8xf32> to vector<8x1xf32>
    %36 = vector.broadcast %35 : vector<8x1xf32> to vector<8x8xf32>
    %37 = arith.subf %33, %36 : vector<8x8xf32>
    %38 = math.exp %37 : vector<8x8xf32>
    %cst_14 = arith.constant dense<0.000000e+00> : vector<8xf32>
    %39 = vector.multi_reduction <add>, %38, %cst_14 [1] : vector<8x8xf32> to vector<8xf32>
    %40 = vector.shape_cast %39 : vector<8xf32> to vector<8x1xf32>
    %41 = arith.truncf %38 : vector<8x8xf32> to vector<8x8xbf16>
    %42 = arith.truncf %30 : vector<8x8xf32> to vector<8x8xbf16>
    %cst_15 = arith.constant dense<0.000000e+00> : vector<8x8xf32>
    %43 = tpu.matmul %41, %42, %cst_15 {dimension_numbers = #tpu.dot_dimension_numbers<[1], [0], [0], [1], [0, 0, 1, 1], [], []>} : vector<8x8xbf16>, vector<8x8xbf16>, vector<8x8xf32> -> vector<8x8xf32>
    %44 = vector.broadcast %40 : vector<8x1xf32> to vector<8x8xf32>
    %45 = arith.divf %43, %44 : vector<8x8xf32>
    %46 = vector.extract_strided_slice %27 {offsets = [0, 16], sizes = [8, 16], strides = [1, 1]} : vector<8x160xf32> to vector<8x16xf32>
    %47 = vector.extract_strided_slice %27 {offsets = [0, 80], sizes = [8, 16], strides = [1, 1]} : vector<8x160xf32> to vector<8x16xf32>
    %48 = vector.extract_strided_slice %27 {offsets = [0, 136], sizes = [8, 8], strides = [1, 1]} : vector<8x160xf32> to vector<8x8xf32>
    %49 = arith.truncf %46 : vector<8x16xf32> to vector<8x16xbf16>
    %50 = arith.truncf %47 : vector<8x16xf32> to vector<8x16xbf16>
    %cst_16 = arith.constant dense<0.000000e+00> : vector<8x8xf32>
    %51 = tpu.matmul %49, %50, %cst_16 {dimension_numbers = #tpu.dot_dimension_numbers<[1], [1], [0], [0], [0, 0, 1, 0], [], []>} : vector<8x16xbf16>, vector<8x16xbf16>, vector<8x8xf32> -> vector<8x8xf32>
    %cst_17 = arith.constant dense<0xFF800000> : vector<8xf32>
    %52 = vector.multi_reduction <maximumf>, %51, %cst_17 [1] : vector<8x8xf32> to vector<8xf32>
    %53 = vector.shape_cast %52 : vector<8xf32> to vector<8x1xf32>
    %54 = vector.broadcast %53 : vector<8x1xf32> to vector<8x8xf32>
    %55 = arith.subf %51, %54 : vector<8x8xf32>
    %56 = math.exp %55 : vector<8x8xf32>
    %cst_18 = arith.constant dense<0.000000e+00> : vector<8xf32>
    %57 = vector.multi_reduction <add>, %56, %cst_18 [1] : vector<8x8xf32> to vector<8xf32>
    %58 = vector.shape_cast %57 : vector<8xf32> to vector<8x1xf32>
    %59 = arith.truncf %56 : vector<8x8xf32> to vector<8x8xbf16>
    %60 = arith.truncf %48 : vector<8x8xf32> to vector<8x8xbf16>
    %cst_19 = arith.constant dense<0.000000e+00> : vector<8x8xf32>
    %61 = tpu.matmul %59, %60, %cst_19 {dimension_numbers = #tpu.dot_dimension_numbers<[1], [0], [0], [1], [0, 0, 1, 1], [], []>} : vector<8x8xbf16>, vector<8x8xbf16>, vector<8x8xf32> -> vector<8x8xf32>
    %62 = vector.broadcast %58 : vector<8x1xf32> to vector<8x8xf32>
    %63 = arith.divf %61, %62 : vector<8x8xf32>
    %64 = vector.extract_strided_slice %27 {offsets = [0, 32], sizes = [8, 16], strides = [1, 1]} : vector<8x160xf32> to vector<8x16xf32>
    %65 = vector.extract_strided_slice %27 {offsets = [0, 96], sizes = [8, 16], strides = [1, 1]} : vector<8x160xf32> to vector<8x16xf32>
    %66 = vector.extract_strided_slice %27 {offsets = [0, 144], sizes = [8, 8], strides = [1, 1]} : vector<8x160xf32> to vector<8x8xf32>
    %67 = arith.truncf %64 : vector<8x16xf32> to vector<8x16xbf16>
    %68 = arith.truncf %65 : vector<8x16xf32> to vector<8x16xbf16>
    %cst_20 = arith.constant dense<0.000000e+00> : vector<8x8xf32>
    %69 = tpu.matmul %67, %68, %cst_20 {dimension_numbers = #tpu.dot_dimension_numbers<[1], [1], [0], [0], [0, 0, 1, 0], [], []>} : vector<8x16xbf16>, vector<8x16xbf16>, vector<8x8xf32> -> vector<8x8xf32>
    %cst_21 = arith.constant dense<0xFF800000> : vector<8xf32>
    %70 = vector.multi_reduction <maximumf>, %69, %cst_21 [1] : vector<8x8xf32> to vector<8xf32>
    %71 = vector.shape_cast %70 : vector<8xf32> to vector<8x1xf32>
    %72 = vector.broadcast %71 : vector<8x1xf32> to vector<8x8xf32>
    %73 = arith.subf %69, %72 : vector<8x8xf32>
    %74 = math.exp %73 : vector<8x8xf32>
    %cst_22 = arith.constant dense<0.000000e+00> : vector<8xf32>
    %75 = vector.multi_reduction <add>, %74, %cst_22 [1] : vector<8x8xf32> to vector<8xf32>
    %76 = vector.shape_cast %75 : vector<8xf32> to vector<8x1xf32>
    %77 = arith.truncf %74 : vector<8x8xf32> to vector<8x8xbf16>
    %78 = arith.truncf %66 : vector<8x8xf32> to vector<8x8xbf16>
    %cst_23 = arith.constant dense<0.000000e+00> : vector<8x8xf32>
    %79 = tpu.matmul %77, %78, %cst_23 {dimension_numbers = #tpu.dot_dimension_numbers<[1], [0], [0], [1], [0, 0, 1, 1], [], []>} : vector<8x8xbf16>, vector<8x8xbf16>, vector<8x8xf32> -> vector<8x8xf32>
    %80 = vector.broadcast %76 : vector<8x1xf32> to vector<8x8xf32>
    %81 = arith.divf %79, %80 : vector<8x8xf32>
    %82 = vector.extract_strided_slice %27 {offsets = [0, 48], sizes = [8, 16], strides = [1, 1]} : vector<8x160xf32> to vector<8x16xf32>
    %83 = vector.extract_strided_slice %27 {offsets = [0, 112], sizes = [8, 16], strides = [1, 1]} : vector<8x160xf32> to vector<8x16xf32>
    %84 = vector.extract_strided_slice %27 {offsets = [0, 152], sizes = [8, 8], strides = [1, 1]} : vector<8x160xf32> to vector<8x8xf32>
    %85 = arith.truncf %82 : vector<8x16xf32> to vector<8x16xbf16>
    %86 = arith.truncf %83 : vector<8x16xf32> to vector<8x16xbf16>
    %cst_24 = arith.constant dense<0.000000e+00> : vector<8x8xf32>
    %87 = tpu.matmul %85, %86, %cst_24 {dimension_numbers = #tpu.dot_dimension_numbers<[1], [1], [0], [0], [0, 0, 1, 0], [], []>} : vector<8x16xbf16>, vector<8x16xbf16>, vector<8x8xf32> -> vector<8x8xf32>
    %cst_25 = arith.constant dense<0xFF800000> : vector<8xf32>
    %88 = vector.multi_reduction <maximumf>, %87, %cst_25 [1] : vector<8x8xf32> to vector<8xf32>
    %89 = vector.shape_cast %88 : vector<8xf32> to vector<8x1xf32>
    %90 = vector.broadcast %89 : vector<8x1xf32> to vector<8x8xf32>
    %91 = arith.subf %87, %90 : vector<8x8xf32>
    %92 = math.exp %91 : vector<8x8xf32>
    %cst_26 = arith.constant dense<0.000000e+00> : vector<8xf32>
    %93 = vector.multi_reduction <add>, %92, %cst_26 [1] : vector<8x8xf32> to vector<8xf32>
    %94 = vector.shape_cast %93 : vector<8xf32> to vector<8x1xf32>
    %95 = arith.truncf %92 : vector<8x8xf32> to vector<8x8xbf16>
    %96 = arith.truncf %84 : vector<8x8xf32> to vector<8x8xbf16>
    %cst_27 = arith.constant dense<0.000000e+00> : vector<8x8xf32>
    %97 = tpu.matmul %95, %96, %cst_27 {dimension_numbers = #tpu.dot_dimension_numbers<[1], [0], [0], [1], [0, 0, 1, 1], [], []>} : vector<8x8xbf16>, vector<8x8xbf16>, vector<8x8xf32> -> vector<8x8xf32>
    %98 = vector.broadcast %94 : vector<8x1xf32> to vector<8x8xf32>
    %99 = arith.divf %97, %98 : vector<8x8xf32>
    %100 = tpu.concatenate %45, %63, %81, %99 in 1 : vector<8x8xf32>, vector<8x8xf32>, vector<8x8xf32>, vector<8x8xf32> -> vector<8x32xf32>
    %101 = arith.addf %100, %1 : vector<8x32xf32>
    %c0_28 = arith.constant 0 : index
    %c0_29 = arith.constant 0 : index
    %c0_30 = arith.constant 0 : index
    %102 = vector.load %arg5[%c0_28, %c0_29, %c0_30] : memref<1x8x32xf32, #tpu.memory_space<vmem>>, vector<1x8x32xf32>
    %103 = vector.shape_cast %102 : vector<1x8x32xf32> to vector<8x32xf32>
    %104 = vector.shape_cast %101 : vector<8x32xf32> to vector<1x8x32xf32>
    tpu.vector_store %arg5[%c0_28, %c0_29, %c0_30], %104 {strides = array<i32>} : memref<1x8x32xf32, #tpu.memory_space<vmem>>, vector<1x8x32xf32>,
    return
  }
  func.func @transform_0(%arg0: i32) -> (i32, i32, i32) {
    %c0_i32 = arith.constant 0 : i32
    %c0_i32_0 = arith.constant 0 : i32
    %c0_i32_1 = arith.constant 0 : i32
    return %arg0, %c0_i32, %c0_i32_0 : i32, i32, i32
  }
  func.func @transform_1(%arg0: i32) -> (i32, i32) {
    %c0_i32 = arith.constant 0 : i32
    %c0_i32_0 = arith.constant 0 : i32
    %c0_i32_1 = arith.constant 0 : i32
    return %c0_i32, %c0_i32_0 : i32, i32
  }
  func.func @transform_2(%arg0: i32) -> (i32, i32) {
    %c0_i32 = arith.constant 0 : i32
    %c0_i32_0 = arith.constant 0 : i32
    %c0_i32_1 = arith.constant 0 : i32
    return %c0_i32, %c0_i32_0 : i32, i32
  }
  func.func @transform_3(%arg0: i32) -> (i32, i32) {
    %c0_i32 = arith.constant 0 : i32
    %c0_i32_0 = arith.constant 0 : i32
    %c0_i32_1 = arith.constant 0 : i32
    return %c0_i32, %c0_i32_0 : i32, i32
  }
  func.func @transform_4(%arg0: i32) -> (i32, i32, i32) {
    %c0_i32 = arith.constant 0 : i32
    %c0_i32_0 = arith.constant 0 : i32
    %c0_i32_1 = arith.constant 0 : i32
    return %arg0, %c0_i32, %c0_i32_0 : i32, i32, i32
  }
}

</mosaic_0001>

<bundles_post_ra>
// kernel: tpu_custom_call.1
= control target key start
LH: loop header
LB: loop body
LE: loop exit
PB: predicated region body
PF: predicated region fallthrough
CT: control target
= control target key end

     0   :  { %9 = vsyncpa [#allocation3], 0  ;;  %s1861_s0 = inlined_call_operand.hbm [shape: f32[2,8,32], index: 0, kind: input, shape index: {}]   ;;  %s1862_s1 = inlined_call_operand.hbm [shape: bf16[32,160], index: 1, kind: input, shape index: {}]   ;;  %s1863_s2 = inlined_call_operand.hbm [shape: f32[3,160], index: 2, kind: input, shape index: {}]   ;;  %s1864_s3 = inlined_call_operand.hbm [shape: f32[160,160], index: 3, kind: input, shape index: {}]   ;;  %s1865_s4 = inlined_call_operand.hbm [shape: f32[2,8,32], index: 4, kind: output, shape index: {}]  }
   0x1   :  { %11 = vsyncpa [#allocation3 + $0x1], 0 }
   0x2   :  { %12 = vsyncpa [#allocation6], 0 }
   0x3   :  { %13 = vsyncpa [#allocation9], 0 }
   0x4   :  { %14 = vsyncpa [#allocation4], 0 }
   0x5   :  { %16 = vsyncpa [#allocation4 + $0x1], 0  ;;  %s1611_s15 = smov 0   ;;  %s1613_s16 = smov 0  }
   0x6   :  { %s1615_s17 = smov 0   ;;  %s1617_s18 = smov 0  }
   0x7 LB: > { %s1632_s19 = sadd.s32 4294967295, %s1561_s18   ;;  %s1165_s20 = sadd.s32 4294967294, %s1561_s18   ;;  %s1561_s18 = sphi %s1617_s18, %s1889_s18   ;;  %s1557_s17 = sphi %s1615_s17, %s1888_s17   ;;  %s1553_s16 = sphi %s1613_s16, %s1887_s16   ;;  %s1549_s15 = sphi %s1611_s15, %s1886_s15  }
   0x8   : > { %p42_p0 = scmp.ne.s32.totalorder %s1553_s16, %s1549_s15  ;;  %p1866_p1 = scmp.eq.s32.totalorder %s1632_s19, 0 }
   0x9   : > { %p135_p3 = scmp.eq.s32.totalorder %s1165_s20, 1  ;;  %p1166_p5 = scmp.ge.s32.totalorder %s1561_s18, 1 }
   0xa   : > { %p1641_p4 = por %p1866_p1, %p42_p0  ;;  %p142_p7 = scmp.lt.s32.totalorder %s1561_s18, 3 }
   0xb   : > { %p1646_p6 = por %p135_p3, %p42_p0  ;;  %s1563_s24 = smov [#allocation5]  }
   0xc   : > { %s1870_s21 = scalar_select %p1641_p4, 1, 0 }
   0xd   : > { %s1871_s22 = scalar_select %p1646_p6, 1, 0 }
   0xe   : > { %p1651_p8 = pnand %p1166_p5, %p142_p7  ;;  %s154_s25 = sshll.u32 %s1563_s24, 4  ;;  %s155_s25 = int_to_ptr.vmem [resolvable:$true] %s154_s25 }
   0xf   : > { %s1564_s27 = smov [#allocation7]   ;;  %s1565_s29 = smov [#allocation8]  }
  0x10   : > { %s1872_s23 = scalar_select %p1651_p8, 1, 0 }
  0x11   : > { %p1278_p9 = pneg %p1651_p8  ;;  %s168_s28 = sshll.u32 %s1564_s27, 4  ;;  %s169_s28 = int_to_ptr.vmem [resolvable:$true] %s168_s28 }
  0x12   : > { %s178_s30 = sshll.u32 %s1565_s29, 4  ;;  %s1394_s5 = scalar_lea.vmem %s155_s25, 512  ;;  %s179_s30 = int_to_ptr.vmem [resolvable:$true] %s178_s30 }
  0x13   : > { %p1660_p11 = pnand %p1278_p9, %p1866_p1  ;;  %p1395_p13 = scmp.ne.s32.totalorder %s155_s25, %s1394_s5 }
  0x14   : > { %p1402_p5 = scmp.lt.s32.totalorder %s155_s25, %s155_s25  ;;  %p1403_p7 = scmp.lt.s32.totalorder %s1394_s5, %s1394_s5 }
  0x15   : > { %p1385_p12 = pneg %p1660_p11 }
  0x16   : > { %p1404_p9 = por %p1403_p7, %p1402_p5 }
  0x17   : > { %p1397_p0 = pnand %p1395_p13, %p1385_p12 }
  0x19   : > { %p1398_p3 = pneg %p1397_p0 }
  0x1b   : > { %p1405_p10 = pnand %p1404_p9, %p1398_p3 }
  0x1d   : > { %1408 = shalt.err (!%p1405_p10)
}
  0x1e   : > { %s1566_s6 = smov 128   ;;  %s1567_s7 = smov 8  }
  0x1f   : > { %1281 = dma.hbm_to_vmem [thread:$0]  (!%p1660_p11), %s1862_s1, 512, %s155_s25, [#allocation6], %s1566_s6, %s1566_s6, %s1567_s7  }
  0x20   : > { %s1420_s10 = scalar_lea.vmem %s169_s28, 128  ;;  %p1428_p2 = scmp.lt.s32.totalorder %s169_s28, %s169_s28 }
  0x21   : > { %p1421_p1 = scmp.ne.s32.totalorder %s169_s28, %s1420_s10  ;;  %p1429_p6 = scmp.lt.s32.totalorder %s1420_s10, %s1420_s10 }
  0x23   : > { %p1423_p13 = pnand %p1421_p1, %p1385_p12  ;;  %p1430_p5 = por %p1429_p6, %p1428_p2 }
  0x25   : > { %p1424_p0 = pneg %p1423_p13 }
  0x27   : > { %p1431_p3 = pnand %p1430_p5, %p1424_p0 }
  0x29   : > { %1434 = shalt.err (!%p1431_p3)
}
  0x2a   : > { %1284 = dma.hbm_to_vmem [thread:$0]  (!%p1660_p11), %s1863_s2, 128, %s169_s28, [#allocation6]  }
  0x2b   : > { %s1446_s13 = scalar_lea.vmem %s179_s30, 5120  ;;  %p1454_p9 = scmp.lt.s32.totalorder %s179_s30, %s179_s30 }
  0x2c   : > { %p1447_p10 = scmp.ne.s32.totalorder %s179_s30, %s1446_s13  ;;  %p1455_p13 = scmp.lt.s32.totalorder %s1446_s13, %s1446_s13 }
  0x2e   : > { %p1449_p7 = pnand %p1447_p10, %p1385_p12  ;;  %p1456_p4 = por %p1455_p13, %p1454_p9 }
  0x30   : > { %p1450_p1 = pneg %p1449_p7 }
  0x32   : > { %p1457_p2 = pnand %p1456_p4, %p1450_p1 }
  0x34   : > { %1460 = shalt.err (!%p1457_p2)
}
  0x35   : > { %s1568_s14 = smov 256   ;;  %s1569_s20 = smov 16  }
  0x36   : > { %1287 = dma.hbm_to_vmem [thread:$0]  (!%p1660_p11), %s1864_s3, 5120, %s179_s30, [#allocation9], %s1568_s14, %s1568_s14, %s1569_s20  }
  0x37   : > { %s1691_s27 = sadd.s32 1, %s1561_s18   ;;  %s29_s29 = sadd.s32 1, %s1557_s17 }
  0x38   : > { %s26_s28 = ssub.s32 %s1561_s18, %s1691_s27  ;;  %p36_p6 = scmp.ne.s32.totalorder %s1557_s17, %s1553_s16 }
  0x39   : > { %p27_p4 = scmp.eq.s32.totalorder %s26_s28, 0  ;;  %p37_p12 = scmp.eq.s32.totalorder %s1561_s18, 0 }
  0x3a   : > { %p1299_p0 = scmp.lt.s32.totalorder %s1561_s18, 2  ;;  %p1874_p3 = scmp.eq.s32.totalorder %s1632_s19, 1 }
  0x3b   : > { %s1701_s5 = scalar_select %p27_p4, %s1557_s17, %s29_s29  }
  0x3c   : > { %p38_p5 = por %p37_p12, %p36_p6  ;;  %p1705_p10 = por %p1874_p3, %p36_p6 }
  0x3d   : > { %s192_s26 = sand.u32 1, %s1557_s17   ;;  %s1172_s7 = sshll.u32 %s1561_s18, 7 }
  0x3e   : > { %s1875_s6 = scalar_select %p1705_p10, 1, 0 }
  0x3f   : > { %s1171_s30 = sshll.u32 %s192_s26, 3  ;;  %s1714_s10 = scalar_lea.hbm %s1861_s0, %s1172_s7 }
  0x40   : > { %s196_s11 = scalar_lea.vmem [#allocation2], %s1171_s30  ;;  %p1716_p11 = pnand %p1299_p0, %p38_p5 }
  0x41   : > { %s203_s12 = sshll.u32 %s196_s11, 4  ;;  %s193_s14 = scalar_lea.sflag [#allocation3], %s192_s26  ;;  %s204_s12 = int_to_ptr.vmem [resolvable:$true] %s203_s12 }
  0x42   : > { %s1461_s20 = scalar_lea.hbm %s1714_s10, 128  ;;  %p1463_p1 = pneg %p1716_p11 }
  0x43   : > { %p1462_p7 = scmp.ne.s32.totalorder %s1714_s10, %s1461_s20  ;;  %s1466_s28 = scalar_lea.hbm %s1861_s0, 256 }
  0x44   : > { %p1467_p2 = scmp.lt.s32.totalorder %s1714_s10, %s1861_s0  ;;  %p1468_p4 = scmp.lt.s32.totalorder %s1466_s28, %s1461_s20 }
  0x45   : > { %p1464_p9 = pnand %p1463_p1, %p1462_p7 }
  0x46   : > { %p1469_p6 = por %p1468_p4, %p1467_p2 }
  0x47   : > { %p1465_p13 = pneg %p1464_p9 }
  0x49   : > { %p1470_p12 = pnand %p1469_p6, %p1465_p13 }
  0x4b   : > { %1473 = shalt.err (!%p1470_p12)
}
  0x4c   : > { %s1474_s30 = scalar_lea.vmem %s204_s12, 128  ;;  %s1570_s26 = smov [#allocation2]  }
  0x4d   : > { %p1475_p0 = scmp.ne.s32.totalorder %s204_s12, %s1474_s30  ;;  %s1479_s8 = sshll.u32 %s1570_s26, 4  ;;  %s1480_s8 = int_to_ptr.vmem [resolvable:$false] %s1479_s8 }
  0x4e   : > { %s1481_s9 = scalar_lea.vmem %s1480_s8, 256  ;;  %p1482_p7 = scmp.lt.s32.totalorder %s204_s12, %s1480_s8 }
  0x4f   : > { %p1477_p5 = pnand %p1475_p0, %p1463_p1  ;;  %p1483_p9 = scmp.lt.s32.totalorder %s1481_s9, %s1474_s30 }
  0x51   : > { %p1478_p3 = pneg %p1477_p5  ;;  %p1484_p10 = por %p1483_p9, %p1482_p7 }
  0x53   : > { %p1485_p8 = pnand %p1484_p10, %p1478_p3 }
  0x55   : > { %1488 = shalt.err (!%p1485_p8)
}
  0x56   : > { %1291 = dma.hbm_to_vmem [thread:$0]  (!%p1716_p11), %s1714_s10, 128, %s204_s12, %s193_s14  }
  0x57   : > { %p1877_p13 = scmp.ne.s32.totalorder %s1872_s23, 0 }
  0x58   : > { %s1737_s11 = sand.u32 (!%p1877_p13), 1, %s1553_s16   ;;  %p1878_p10 = scmp.ne.s32.totalorder (!%p1877_p13), %s1870_s21, 0 }
  0x59   : > { %212 = sbr.rel (%p1877_p13) target bundleno = 1385 (0x569), region = 36  ;;  %s1174_s20 = sshll.u32 (!%p1877_p13), %s1737_s11, 3 }
  0x5a   : > { %s215_s24 = scalar_lea.sflag (!%p1877_p13), [#allocation3], %s1737_s11  ;;  %s218_s25 = scalar_lea.vmem (!%p1877_p13), [#allocation2], %s1174_s20 }
  0x5e   : > { %1532 = dma.done.wait (%p1878_p10), %s215_s24, 128  }
  0x5f   : > { %1534 = vsyncadd (%p1878_p10), %s215_s24, 4294967168  ;;  %p1879_p8 = scmp.eq.s32.totalorder %s1632_s19, 0 }
  0x61   : > { %1536 = dma.done.wait (%p1879_p8), [#allocation6], 640   ;;  %p1880_p11 = pmov %p1879_p8 }
  0x62   : > { %p1881_p1 = pmov %p1879_p8 }
  0x63   : > { %1538 = vsyncadd (%p1880_p11), [#allocation6], 4294966656 }
  0x64   : > { %1540 = dma.done.wait (%p1881_p1), [#allocation9], 5120   ;;  %p1882_p2 = pmov %p1881_p1 }
  0x65   : > { %v1571_v0 = vmov 0   ;;  %v1357_v1 = vld [vmem:[#allocation5 + $0x14] ss:$8 sps:$4 sm:$0xff]   ;;  %v1359_v2 = vld [vmem:[#allocation5 + $0x10] ss:$8 sps:$4 sm:$0xff]   ;;  %v378_v6 = vld [vmem:[#allocation8 + $0xf8] sm:$0xff]  ;;  %v264_v47 = vlaneseq }
  0x66   : > { %1542 = vsyncadd (%p1882_p2), [#allocation9], 4294962176  ;;  %338 = vmatprep.mubr.bf16.mxu0 %v1571_v0  ;;  %318 = vmatprep.subr.bf16.mxu0 %v1357_v1  ;;  %v1360_v3 = vld [vmem:[#allocation5 + $0x4] ss:$8 sps:$4 sm:$0xff]   ;;  %v1362_v4 = vld [vmem:[#allocation5] ss:$8 sps:$4 sm:$0xff]  }
  0x67   : > { %v1755_v5 = vld [vmem:[%s218_s25] sm:$0xff]  ;;  %319 = vmatpush1.bf16.msra.mxu0 %v1359_v2  ;;  %390 = vmatprep.subr.mxu1 %v378_v6  ;;  %v375_v9 = vld [vmem:[#allocation8 + $0xe0] sm:$0xff]  ;;  %v374_v10 = vld [vmem:[#allocation8 + $0xd8] sm:$0xff]  ;;  %vm302_vm0 = vcmask 261120   ;;  %v265_v48 = vshrl.u32 %v264_v47, 7  ;;  %v1572_v0 = vmov 0.0  }
  0x68   : > { %v377_v7 = vld [vmem:[#allocation8 + $0xf0] sm:$0xff]  ;;  %v376_v8 = vld [vmem:[#allocation8 + $0xe8] sm:$0xff]  ;;  %320 = vmatprep.subr.bf16.mxu0 %v1360_v3  ;;  %v258_v11 = vpack.c.bf16 %v1755_v5, %v1755_v5  ;;  %v371_v14 = vld [vmem:[#allocation8 + $0xc0] sm:$0xff]  ;;  %vm1573_vm1 = vmmov 0   ;;  %vm657_vm2 = vcmask 1043456   ;;  %s1574_s21 = smov 112  }
  0x69   : > { %391 = vmatpush1.msra.mxu1 %v377_v7  ;;  %v373_v12 = vld [vmem:[#allocation8 + $0xd0] sm:$0xff]  ;;  %v372_v13 = vld [vmem:[#allocation8 + $0xc8] sm:$0xff]  ;;  %v370_v15 = vld [vmem:[#allocation8 + $0xb8] sm:$0xff]  ;;  %v266_v49 = vsub.s32 0, %v265_v48  ;;  %v270_v51 = vsub.s32 4, %v265_v48  ;;  %s1575_s23 = smov 64  }
  0x6a   : > { %392 = vmatprep.subr.mxu1 %v376_v8  ;;  %v369_v16 = vld [vmem:[#allocation8 + $0xb0] sm:$0xff]  ;;  %v368_v17 = vld [vmem:[#allocation8 + $0xa8] sm:$0xff]  ;;  %v367_v18 = vld [vmem:[#allocation8 + $0xa0] sm:$0xff]  ;;  %s1576_s10 = smov 32   ;;  %s1577_s12 = smov 48   ;;  %vm595_vm3 = vcmask 130048  }
  0x6b   : > { %321 = vmatpush1.bf16.msra.mxu0 %v1362_v4  ;;  %393 = vmatpush1.msra.mxu1 %v375_v9  ;;  %v366_v19 = vld [vmem:[#allocation8 + $0x98] sm:$0xff]  ;;  %v365_v20 = vld [vmem:[#allocation8 + $0x90] sm:$0xff]  ;;  %v364_v21 = vld [vmem:[#allocation8 + $0x88] sm:$0xff]  ;;  %s1578_s13 = smov 16   ;;  %s1579_s14 = smov 96   ;;  %vm642_vm4 = vcmask 64512  }
  0x6c   : > { %466 = vmatprep.subr.mxu0 %v378_v6  ;;  %394 = vmatprep.subr.mxu1 %v374_v10  ;;  %v363_v22 = vld [vmem:[#allocation8 + $0x80] sm:$0xff]  ;;  %v362_v23 = vld [vmem:[#allocation8 + $0x78] sm:$0xff]  ;;  %v361_v24 = vld [vmem:[#allocation8 + $0x70] sm:$0xff]  ;;  %s1580_s28 = smov 80   ;;  %s1581_s29 = smov 120   ;;  %vm1048_vm5 = vcmask 195584  }
  0x6d   : > { %395 = vmatpush1.msra.mxu1 %v373_v12  ;;  %v360_v25 = vld [vmem:[#allocation8 + $0x68] sm:$0xff]  ;;  %v359_v26 = vld [vmem:[#allocation8 + $0x60] sm:$0xff]  ;;  %v358_v27 = vld [vmem:[#allocation8 + $0x58] sm:$0xff]  ;;  %s1582_s7 = smov 104   ;;  %s1583_s30 = smov 8  }
  0x6e   : > { %1183 = vmatmul.mubr.msk.bf16.vlgmr.msra.gmra.mxu0 %vm302_vm0, %v258_v11  ;;  %396 = vmatprep.subr.mxu1 %v372_v13  ;;  %v357_v28 = vld [vmem:[#allocation8 + $0x50] sm:$0xff]  ;;  %v356_v29 = vld [vmem:[#allocation8 + $0x48] sm:$0xff]  ;;  %v355_v30 = vld [vmem:[#allocation8 + $0x40] sm:$0xff]  ;;  %s1584_s26 = smov 24   ;;  %s1195_s8 = sshll.u32 %s1632_s19, 7 }
  0x6f   : > { %467 = vmatpush1.msra.mxu0 %v377_v7  ;;  %397 = vmatpush1.msra.mxu1 %v371_v14  ;;  %v354_v31 = vld [vmem:[#allocation8 + $0x38] sm:$0xff]  ;;  %v353_v32 = vld [vmem:[#allocation8 + $0x30] sm:$0xff]  ;;  %v352_v33 = vld [vmem:[#allocation8 + $0x28] sm:$0xff]  ;;  %s254_s9 = scalar_lea.vmem [#allocation10], %s1174_s20  ;;  %p1883_p6 = scmp.ne.s32.totalorder %s1875_s6, 0 }
  0x70   : > { %468 = vmatprep.subr.mxu0 %v376_v8  ;;  %398 = vmatprep.subr.mxu1 %v370_v15  ;;  %v351_v34 = vld [vmem:[#allocation8 + $0x20] sm:$0xff]  ;;  %v350_v35 = vld [vmem:[#allocation8 + $0x18] sm:$0xff]  ;;  %v349_v36 = vld [vmem:[#allocation8 + $0x10] sm:$0xff]  ;;  %s1066_s24 = sshll.u32 %s254_s9, 4  ;;  %s1585_s19 = smov [#allocation10]   ;;  %s1067_s24 = int_to_ptr.vmem [resolvable:$true] %s1066_s24 }
  0x71   : > { %469 = vmatpush1.msra.mxu0 %v375_v9  ;;  %399 = vmatpush1.msra.mxu1 %v369_v16  ;;  %v348_v37 = vld [vmem:[#allocation8 + $0x8] sm:$0xff]  ;;  %v347_v38 = vld [vmem:[#allocation8] sm:$0xff]  ;;  %v386_v39 = vld [vmem:[#allocation8 + $0x138] sm:$0xff]  ;;  %s1493_s20 = sshll.u32 %s1585_s19, 4  ;;  %s1494_s20 = int_to_ptr.vmem [resolvable:$false] %s1493_s20 }
  0x72   : > { %470 = vmatprep.subr.mxu0 %v374_v10  ;;  %400 = vmatprep.subr.mxu1 %v368_v17  ;;  %v385_v40 = vld [vmem:[#allocation8 + $0x130] sm:$0xff]  ;;  %v384_v41 = vld [vmem:[#allocation8 + $0x128] sm:$0xff]  ;;  %v383_v42 = vld [vmem:[#allocation8 + $0x120] sm:$0xff]  ;;  %p1496_p5 = scmp.lt.s32.totalorder %s1067_s24, %s1494_s20 }
  0x73   : > { %471 = vmatpush1.msra.mxu0 %v373_v12  ;;  %401 = vmatpush1.msra.mxu1 %v367_v18  ;;  %v382_v43 = vld [vmem:[#allocation8 + $0x118] sm:$0xff]  ;;  %v381_v44 = vld [vmem:[#allocation8 + $0x110] sm:$0xff]  ;;  %v380_v45 = vld [vmem:[#allocation8 + $0x108] sm:$0xff] }
  0x74   : > { %472 = vmatprep.subr.mxu0 %v372_v13  ;;  %402 = vmatprep.subr.mxu1 %v366_v19  ;;  %v379_v46 = vld [vmem:[#allocation8 + $0x100] sm:$0xff]  ;;  %v257_v50 = vld [vmem:[#allocation7] sm:$0x77] }
  0x75   : > { %473 = vmatpush1.msra.mxu0 %v371_v14  ;;  %403 = vmatpush1.msra.mxu1 %v365_v20  ;;  %v267_v52 = vrot.slane %v257_v50, %v266_v49  ;;  %v271_v53 = vrot.slane %v257_v50, %v270_v51  ;;  %v553_v14 = vsub.s32 1, %v265_v48 }
  0x76   : > { %474 = vmatprep.subr.mxu0 %v370_v15  ;;  %404 = vmatprep.subr.mxu1 %v364_v21  ;;  %v573_v15 = vsub.s32 2, %v265_v48 }
  0x77   : > { %475 = vmatpush1.msra.mxu0 %v369_v16  ;;  %405 = vmatpush1.msra.mxu1 %v363_v22  ;;  %v277_v54 = vrot.slane %v267_v52, %v266_v49  ;;  %v281_v55 = vrot.slane %v271_v53, %v266_v49  ;;  %v557_v16 = vsub.s32 5, %v265_v48 }
  0x78   : > { %476 = vmatprep.subr.mxu0 %v368_v17  ;;  %406 = vmatprep.subr.mxu1 %v362_v23  ;;  %v554_v17 = vrot.slane %v257_v50, %v553_v14 }
  0x79   : > { %477 = vmatpush1.msra.mxu0 %v367_v18  ;;  %407 = vmatpush1.msra.mxu1 %v361_v24  ;;  %v577_v18 = vsub.s32 6, %v265_v48 }
  0x7a   : > { %478 = vmatprep.subr.mxu0 %v366_v19  ;;  %408 = vmatprep.subr.mxu1 %v360_v25  ;;  %v574_v19 = vrot.slane %v257_v50, %v573_v15 }
  0x7b   : > { %479 = vmatpush1.msra.mxu0 %v365_v20  ;;  %409 = vmatpush1.msra.mxu1 %v359_v26  ;;  %v558_v20 = vrot.slane %v257_v50, %v557_v16 }
  0x7c   : > { %480 = vmatprep.subr.mxu0 %v364_v21  ;;  %410 = vmatprep.subr.mxu1 %v358_v27 }
  0x7d   : > { %481 = vmatpush1.msra.mxu0 %v363_v22  ;;  %411 = vmatpush1.msra.mxu1 %v357_v28  ;;  %v564_v22 = vrot.slane %v554_v17, %v553_v14 }
  0x7e   : > { %482 = vmatprep.subr.mxu0 %v362_v23  ;;  %412 = vmatprep.subr.mxu1 %v356_v29  ;;  %v578_v23 = vrot.slane %v257_v50, %v577_v18 }
  0x7f   : > { %483 = vmatpush1.msra.mxu0 %v361_v24  ;;  %413 = vmatpush1.msra.mxu1 %v355_v30 }
  0x80   : > { %484 = vmatprep.subr.mxu0 %v360_v25  ;;  %414 = vmatprep.subr.mxu1 %v354_v31  ;;  %v584_v25 = vrot.slane %v574_v19, %v573_v15 }
  0x81   : > { %485 = vmatpush1.msra.mxu0 %v359_v26  ;;  %415 = vmatpush1.msra.mxu1 %v353_v32 }
  0x82   : > { %486 = vmatprep.subr.mxu0 %v358_v27  ;;  %416 = vmatprep.subr.mxu1 %v352_v33 }
  0x83   : > { %487 = vmatpush1.msra.mxu0 %v357_v28  ;;  %417 = vmatpush1.msra.mxu1 %v351_v34  ;;  %v568_v28 = vrot.slane %v558_v20, %v553_v14 }
  0x84   : > { %488 = vmatprep.subr.mxu0 %v356_v29  ;;  %418 = vmatprep.subr.mxu1 %v350_v35 }
  0x85   : > { %489 = vmatpush1.msra.mxu0 %v355_v30  ;;  %419 = vmatpush1.msra.mxu1 %v349_v36 }
  0x86   : > { %490 = vmatprep.subr.mxu0 %v354_v31  ;;  %420 = vmatprep.subr.mxu1 %v348_v37 }
  0x87   : > { %491 = vmatpush1.msra.mxu0 %v353_v32  ;;  %421 = vmatpush1.msra.mxu1 %v347_v38  ;;  %v588_v32 = vrot.slane %v578_v23, %v573_v15 }
  0x88   : > { %492 = vmatprep.subr.mxu0 %v352_v33  ;;  %446 = vmatprep.subr.mxu1 %v386_v39 }
  0x89   : > { %493 = vmatpush1.msra.mxu0 %v351_v34  ;;  %447 = vmatpush2.msra.mxu1 %v385_v40 }
  0x8a   : > { %494 = vmatprep.subr.mxu0 %v350_v35  ;;  %448 = vmatprep.subr.mxu1 %v384_v41 }
  0x8b   : > { %495 = vmatpush1.msra.mxu0 %v349_v36  ;;  %449 = vmatpush2.msra.mxu1 %v383_v42 }
  0x8c   : > { %496 = vmatprep.subr.mxu0 %v348_v37  ;;  %450 = vmatprep.subr.mxu1 %v382_v43 }
  0x8d   : > { %497 = vmatpush1.msra.mxu0 %v347_v38  ;;  %451 = vmatpush2.msra.mxu1 %v381_v44 }
  0x8e   : > { %522 = vmatprep.subr.mxu0 %v386_v39  ;;  %452 = vmatprep.subr.mxu1 %v380_v45 }
  0x8f   : > { %523 = vmatpush2.msra.mxu0 %v385_v40  ;;  %453 = vmatpush2.msra.mxu1 %v379_v46 }
  0x90   : > { %524 = vmatprep.subr.mxu0 %v384_v41  ;;  %1214 = vmatprep.subr.bf16.mxu1 %v1572_v0 }
  0x91   : > { %525 = vmatpush2.msra.mxu0 %v383_v42 }
  0x92   : > { %526 = vmatprep.subr.mxu0 %v382_v43 }
  0x93   : > { %527 = vmatpush2.msra.mxu0 %v381_v44 }
  0x94   : > { %528 = vmatprep.subr.mxu0 %v380_v45 }
  0x95   : > { %529 = vmatpush2.msra.mxu0 %v379_v46 }
  0x96   : > { %1220 = vmatprep.subr.bf16.mxu0 %v1572_v0 }
 0x12e   : > { %v340_v56 = vpop.f32.mrf.mxu0 }
 0x12f   : > { %v341_v57 = vadd.f32 %v340_v56, %v277_v54 }
 0x130   : > { %v342_v58 = vpop.f32.mrf.mxu0 }
 0x131   : > { %v343_v59 = vadd.f32 %v342_v58, %v281_v55  ;;  %v461_v62 = vmul.f32 %v341_v57, %v341_v57 }
 0x132   : > { %v344_v60 = vpop.f32.mrf.mxu0 }
 0x133   : > { %v462_v61 = vmul.f32 %v343_v59, %v343_v59  ;;  %1184 = vmatprep.mubr.msk.f32.mxu1 %vm302_vm0, %v343_v59 }
 0x134   : > { %v345_v63 = vpop.f32.mrf.mxu0  ;;  %455 = vmatmul.mubr.f32.vlgmr.msra.gmra.mxu1 %v341_v57 }
 0x135   : > { %1185 = vmatprep.mubr.msk.f32.mxu0 %vm302_vm0, %v462_v61  ;;  %1216 = vmatprep.mubr.msk.bf16.mxu1 %vm1573_vm1, %v1572_v0 }
 0x136   : > { %531 = vmatmul.mubr.f32.vlgmr.msra.gmra.mxu0 %v461_v62 }
 0x137   : > { %1222 = vmatprep.mubr.msk.bf16.mxu0 %vm1573_vm1, %v1572_v0 }
 0x1f4   : > { %v456_v1 = vpop.f32.mrf.mxu1 }
 0x1f5   : > { %v537_v2 = vmul.f32 %v456_v1, %v456_v1  ;;  %v543_v21 = vsub.f32 %v341_v57, %v456_v1 }
 0x1f6   : > { %v458_v3 = vpop.f32.mrf.mxu1  ;;  %v532_v4 = vpop.f32.mrf.mxu0 }
 0x1f7   : > { %v538_v6 = vmul.f32 %v458_v3, %v458_v3  ;;  %v539_v7 = vsub.f32 %v532_v4, %v537_v2  ;;  %v544_v26 = vsub.f32 %v343_v59, %v458_v3 }
 0x1f8   : > { %v534_v8 = vpop.f32.mrf.mxu0 }
 0x1f9   : > { %v541_v9 = vmax.f32 %v539_v7, 0.0  ;;  %v540_v10 = vsub.f32 %v534_v8, %v538_v6 }
 0x1fb   : > { %v545_v11 = vadd.f32 1e-05, %v541_v9  ;;  %v542_v12 = vmax.f32 %v540_v10, 0.0 }
 0x1fd   : > { %1363 = vrsqrt.f32 %v545_v11  ;;  %v546_v13 = vadd.f32 1e-05, %v542_v12 }
 0x1ff   : > { %1365 = vrsqrt.f32 %v546_v13 }
 0x20a   : > { %v1364_v24 = vpop.eup %1363 }
 0x20b   : > { %v549_v27 = vmul.f32 %v1364_v24, %v543_v21 }
 0x20c   : > { %v1366_v29 = vpop.eup %1365 }
 0x20d   : > { %v569_v30 = vmul.f32 %v564_v22, %v549_v27  ;;  %v550_v31 = vmul.f32 %v1366_v29, %v544_v26 }
 0x20f   : > { %v589_v33 = vadd.f32 %v584_v25, %v569_v30  ;;  %v570_v34 = vmul.f32 %v568_v28, %v550_v31 }
 0x211   : > { %v591_v35 = vpack.c.bf16 %v589_v33, %v589_v33  ;;  %v590_v36 = vadd.f32 %v588_v32, %v570_v34 }
 0x213   : > { %703 = vrot.lane.b32.xlu1 %v591_v35, %s1574_s21  ;;  %593 = vrot.lane.b32.xlu0 %v591_v35, %s1575_s23  ;;  %v1769_v37 = vpack.c.bf16 %v590_v36, %v590_v36  ;;  %s1064_s23 = scalar_lea.hbm %s1865_s4, %s1195_s8 }
 0x215   : > { %v659_v38 = vsel %vm657_vm2, %v1769_v37, 0 }
 0x216   : > { %1221 = vmatpush3.bf16.msra.mxu0 %v659_v38 }
 0x217   : > { %816 = vrot.lane.b32.xlu1 %v591_v35, %s1576_s10  ;;  %705 = vrot.lane.b32.xlu0 %v591_v35, %s1577_s12  ;;  %s1053_s10 = scalar_lea.sflag [#allocation4], %s1737_s11  ;;  %s1489_s12 = scalar_lea.vmem %s1067_s24, 128 }
 0x218   : > { %1232 = vmatprep.subr.bf16.mxu0 %v1572_v0  ;;  %p1490_p4 = scmp.ne.s32.totalorder %s1067_s24, %s1489_s12 }
 0x21a   : > { %p1491_p12 = pnand %p1490_p4, %p1883_p6 }
 0x21b   : > { %926 = vrot.lane.b32.xlu1 %v591_v35, %s1578_s13  ;;  %814 = vrot.lane.b32.xlu0 %v591_v35, %s1579_s14 }
 0x21c   : > { %p1492_p0 = pneg %p1491_p12 }
 0x21f   : > { %924 = vrot.lane.b32.xlu0 %v591_v35, %s1580_s28 }
 0x285   : > { %v594_v39 = vpop.permute.xlu0 %593  ;;  %v704_v42 = vpop.permute.xlu1 %703 }
 0x286   : > { %v600_v40 = vsel %vm595_vm3, %v594_v39, 0 }
 0x287   : > { %1215 = vmatpush3.bf16.xpose.msra.mxu1 %v600_v40 }
 0x288   : > { %1226 = vmatprep.subr.bf16.mxu1 %v1572_v0 }
 0x289   : > { %v706_v41 = vpop.permute.xlu0 %705  ;;  %v817_v44 = vpop.permute.xlu1 %816 }
 0x28a   : > { %v711_v43 = vsel %vm595_vm3, %v706_v41, 0  ;;  %v822_v45 = vsel %vm595_vm3, %v817_v44, 0 }
 0x28d   : > { %v927_v46 = vpop.permute.xlu1 %926  ;;  %v815_v47 = vpop.permute.xlu0 %814 }
 0x28e   : > { %1217 = vmatmul.mubr.msk.bf16.vlgmr.msra.gmra.mxu1 %vm595_vm3, %v591_v35  ;;  %v932_v48 = vsel %vm595_vm3, %v927_v46, 0 }
 0x28f   : > { %1227 = vmatpush3.bf16.xpose.msra.mxu1 %v711_v43  ;;  %1228 = vmatprep.mubr.msk.bf16.mxu1 %vm1573_vm1, %v1572_v0 }
 0x290   : > { %1238 = vmatprep.subr.bf16.mxu1 %v1572_v0 }
 0x291   : > { %v925_v49 = vpop.permute.xlu0 %924 }
 0x296   : > { %1229 = vmatmul.mubr.msk.bf16.vlgmr.msra.gmra.mxu1 %vm595_vm3, %v704_v42 }
 0x297   : > { %1239 = vmatpush3.bf16.xpose.msra.mxu1 %v822_v45  ;;  %1240 = vmatprep.mubr.msk.bf16.mxu1 %vm1573_vm1, %v1572_v0 }
 0x298   : > { %1250 = vmatprep.subr.bf16.mxu1 %v1572_v0 }
 0x29e   : > { %1241 = vmatmul.mubr.msk.bf16.vlgmr.msra.gmra.mxu1 %vm595_vm3, %v815_v47 }
 0x29f   : > { %1251 = vmatpush3.bf16.xpose.msra.mxu1 %v932_v48  ;;  %1252 = vmatprep.mubr.msk.bf16.mxu1 %vm1573_vm1, %v1572_v0 }
 0x2a6   : > { %1253 = vmatmul.mubr.msk.bf16.vlgmr.msra.gmra.mxu1 %vm595_vm3, %v925_v49 }
 0x34e   : > { %v636_v50 = vpop.f32.mrf.mxu1 }
 0x34f   : > { %v643_v51 = vsel %vm642_vm4, %v636_v50, -inf }
 0x350   : > { %644 = vmax.xlane.f32.xlu1 %v643_v51  ;;  %v1218_v52 = vpop.f32.mrf.mxu1 }
 0x352   : > { %v639_v53 = vpop.f32.mrf.mxu1 }
 0x354   : > { %v1219_v54 = vpop.f32.mrf.mxu1 }
 0x356   : > { %v747_v55 = vpop.f32.mrf.mxu1 }
 0x357   : > { %v753_v56 = vsel %vm642_vm4, %v747_v55, -inf }
 0x358   : > { %754 = vmax.xlane.f32.xlu0 %v753_v56  ;;  %v1230_v57 = vpop.f32.mrf.mxu1 }
 0x35a   : > { %v750_v58 = vpop.f32.mrf.mxu1 }
 0x35c   : > { %v1231_v59 = vpop.f32.mrf.mxu1 }
 0x35e   : > { %v858_v60 = vpop.f32.mrf.mxu1 }
 0x35f   : > { %v864_v61 = vsel %vm642_vm4, %v858_v60, -inf }
 0x360   : > { %865 = vmax.xlane.f32.xlu0 %v864_v61  ;;  %v1242_v62 = vpop.f32.mrf.mxu1 }
 0x361   : > { %874 = vrot.lane.b32.xlu1 %v1769_v37, %s1574_s21 }
 0x362   : > { %v861_v63 = vpop.f32.mrf.mxu1 }
 0x364   : > { %v1243_v1 = vpop.f32.mrf.mxu1 }
 0x366   : > { %v968_v2 = vpop.f32.mrf.mxu1 }
 0x367   : > { %v974_v7 = vsel %vm642_vm4, %v968_v2, -inf }
 0x368   : > { %v1254_v3 = vpop.f32.mrf.mxu1 }
 0x36a   : > { %v971_v4 = vpop.f32.mrf.mxu1 }
 0x36c   : > { %v1255_v6 = vpop.f32.mrf.mxu1 }
 0x376   : > { %764 = vrot.lane.b32.xlu0 %v1769_v37, %s1581_s29 }
 0x385   : > { %975 = vmax.xlane.f32.xlu1 %v974_v7 }
 0x396   : > { %984 = vrot.lane.b32.xlu1 %v1769_v37, %s1582_s7 }
 0x3d9   : > { %v645_v8 = vpop.xlane.xlu1 %644 }
 0x3da   : > { %v646_v9 = vsub.f32 %v636_v50, %v645_v8 }
 0x3dc   : > { %v647_v10 = vmul.f32 1.442695, %v646_v9 }
 0x3dd   : > { %v875_v22 = vpop.permute.xlu1 %874 }
 0x3de   : > { %1367 = vpow2.f32 %v647_v10  ;;  %v880_v25 = vsel %vm657_vm2, %v875_v22, 0 }
 0x3e1   : > { %v755_v11 = vpop.xlane.xlu0 %754 }
 0x3e2   : > { %v756_v12 = vsub.f32 %v747_v55, %v755_v11 }
 0x3e4   : > { %v757_v13 = vmul.f32 1.442695, %v756_v12 }
 0x3e6   : > { %1369 = vpow2.f32 %v757_v13 }
 0x3e9   : > { %v866_v14 = vpop.xlane.xlu0 %865 }
 0x3ea   : > { %v867_v15 = vsub.f32 %v858_v60, %v866_v14 }
 0x3eb   : > { %v1368_v16 = vpop.eup %1367 }
 0x3ec   : > { %v868_v17 = vmul.f32 1.442695, %v867_v15  ;;  %v652_v18 = vpack.c.bf16 %v1368_v16, %v1368_v16  ;;  %v649_v37 = vsel %vm642_vm4, %v1368_v16, 0.0 }
 0x3ed   : > { %v765_v19 = vpop.permute.xlu0 %764 }
 0x3ee   : > { %1371 = vpow2.f32 %v868_v17  ;;  %v770_v20 = vsel %vm657_vm2, %v765_v19, 0  ;;  %1223 = vmatmul.mubr.msk.bf16.vlgmr.msra.gmra.mxu0 %vm642_vm4, %v652_v18 }
 0x3ef   : > { %1233 = vmatpush3.bf16.msra.mxu0 %v770_v20  ;;  %1234 = vmatprep.mubr.msk.bf16.mxu0 %vm1573_vm1, %v1572_v0 }
 0x3f0   : > { %1244 = vmatprep.subr.bf16.mxu0 %v1572_v0 }
 0x3f3   : > { %v1370_v21 = vpop.eup %1369 }
 0x3f4   : > { %v759_v23 = vsel %vm642_vm4, %v1370_v21, 0.0  ;;  %v762_v24 = vpack.c.bf16 %v1370_v21, %v1370_v21 }
 0x3f5   : > { %760 = vadd.xlane.f32.xlu0 %v759_v23 }
 0x3f6   : > { %1235 = vmatmul.mubr.msk.bf16.vlgmr.msra.gmra.mxu0 %vm642_vm4, %v762_v24 }
 0x3f7   : > { %1245 = vmatpush3.bf16.msra.mxu0 %v880_v25  ;;  %1246 = vmatprep.mubr.msk.bf16.mxu0 %vm1573_vm1, %v1572_v0 }
 0x3f8   : > { %1256 = vmatprep.subr.bf16.mxu0 %v1572_v0 }
 0x3fb   : > { %v1372_v26 = vpop.eup %1371 }
 0x3fc   : > { %v870_v27 = vsel %vm642_vm4, %v1372_v26, 0.0  ;;  %v873_v28 = vpack.c.bf16 %v1372_v26, %v1372_v26 }
 0x3fd   : > { %871 = vadd.xlane.f32.xlu1 %v870_v27 }
 0x3fe   : > { %1247 = vmatmul.mubr.msk.bf16.vlgmr.msra.gmra.mxu0 %vm642_vm4, %v873_v28 }
 0x3ff   : > { %1258 = vmatprep.mubr.msk.bf16.mxu0 %vm1573_vm1, %v1572_v0 }
 0x40e   : > { %v976_v29 = vpop.xlane.xlu1 %975 }
 0x40f   : > { %v977_v30 = vsub.f32 %v968_v2, %v976_v29 }
 0x411   : > { %v978_v31 = vmul.f32 1.442695, %v977_v30 }
 0x412   : > { %v985_v32 = vpop.permute.xlu1 %984 }
 0x413   : > { %1373 = vpow2.f32 %v978_v31  ;;  %v990_v33 = vsel %vm657_vm2, %v985_v32, 0 }
 0x414   : > { %1257 = vmatpush3.bf16.msra.mxu0 %v990_v33 }
 0x420   : > { %v1374_v34 = vpop.eup %1373 }
 0x421   : > { %v980_v35 = vsel %vm642_vm4, %v1374_v34, 0.0  ;;  %v983_v36 = vpack.c.bf16 %v1374_v34, %v1374_v34 }
 0x422   : > { %981 = vadd.xlane.f32.xlu0 %v980_v35 }
 0x423   : > { %1259 = vmatmul.mubr.msk.bf16.vlgmr.msra.gmra.mxu0 %vm642_vm4, %v983_v36 }
 0x426   : > { %650 = vadd.xlane.f32.xlu0 %v649_v37 }
 0x47e   : > { %v761_v38 = vpop.xlane.xlu0 %760 }
 0x47f   : > { %1375 = vrcp.f32 %v761_v38 }
 0x486   : > { %v872_v0 = vpop.xlane.xlu1 %871 }
 0x487   : > { %1377 = vrcp.f32 %v872_v0 }
 0x48c   : > { %v1376_v43 = vpop.eup %1375 }
 0x494   : > { %v1378_v49 = vpop.eup %1377 }
 0x4ab   : > { %v982_v55 = vpop.xlane.xlu0 %981 }
 0x4ac   : > { %1379 = vrcp.f32 %v982_v55 }
 0x4ae   : > { %v695_v39 = vpop.f32.mrf.mxu0 }
 0x4af   : > { %v651_v62 = vpop.xlane.xlu0 %650 }
 0x4b0   : > { %v1224_v40 = vpop.f32.mrf.mxu0  ;;  %1381 = vrcp.f32 %v651_v62 }
 0x4b2   : > { %v698_v41 = vpop.f32.mrf.mxu0 }
 0x4b4   : > { %v1225_v42 = vpop.f32.mrf.mxu0 }
 0x4b6   : > { %v806_v44 = vpop.f32.mrf.mxu0 }
 0x4b7   : > { %v813_v45 = vmul.f32 %v1376_v43, %v806_v44 }
 0x4b8   : > { %v1236_v46 = vpop.f32.mrf.mxu0 }
 0x4b9   : > { %1035 = vrot.lane.b32.xlu1 %v813_v45, %s1583_s30  ;;  %v1380_v56 = vpop.eup %1379 }
 0x4ba   : > { %v809_v47 = vpop.f32.mrf.mxu0 }
 0x4bc   : > { %v1237_v48 = vpop.f32.mrf.mxu0 }
 0x4bd   : > { %v1382_v63 = vpop.eup %1381 }
 0x4be   : > { %v916_v50 = vpop.f32.mrf.mxu0  ;;  %v702_v2 = vmul.f32 %v1382_v63, %v695_v39 }
 0x4bf   : > { %v923_v51 = vmul.f32 %v1378_v49, %v916_v50 }
 0x4c0   : > { %v1248_v52 = vpop.f32.mrf.mxu0 }
 0x4c1   : > { %1039 = vrot.lane.b32.xlu0 %v923_v51, %s1578_s13  ;;  %s1495_s13 = scalar_lea.vmem %s1494_s20, 256 }
 0x4c2   : > { %v919_v53 = vpop.f32.mrf.mxu0  ;;  %p1497_p3 = scmp.lt.s32.totalorder %s1495_s13, %s1489_s12 }
 0x4c4   : > { %v1249_v54 = vpop.f32.mrf.mxu0  ;;  %p1498_p7 = por %p1497_p3, %p1496_p5 }
 0x4c6   : > { %p1499_p9 = pnand %p1498_p7, %p1492_p0 }
 0x4e3   : > { %v1026_v57 = vpop.f32.mrf.mxu0 }
 0x4e4   : > { %v1033_v58 = vmul.f32 %v1380_v56, %v1026_v57 }
 0x4e5   : > { %v1260_v59 = vpop.f32.mrf.mxu0 }
 0x4e6   : > { %1043 = vrot.lane.b32.xlu1 %v1033_v58, %s1584_s26 }
 0x4e7   : > { %v1029_v60 = vpop.f32.mrf.mxu0 }
 0x4e9   : > { %v1261_v61 = vpop.f32.mrf.mxu0 }
 0x52b   : > { %v1036_v1 = vpop.permute.xlu1 %1035 }
 0x52c   : > { %v1046_v4 = vsel %vm642_vm4, %v702_v2, %v1036_v1 }
 0x533   : > { %v1040_v3 = vpop.permute.xlu0 %1039 }
 0x534   : > { %v1047_v6 = vsel %vm595_vm3, %v1046_v4, %v1040_v3 }
 0x558   : > { %v1044_v7 = vpop.permute.xlu1 %1043 }
 0x559   : > { %v1049_v8 = vsel %vm1048_vm5, %v1047_v6, %v1044_v7 }
 0x55a   : > { %v1050_v9 = vadd.f32 %v1049_v8, %v1755_v5 }
 0x55c   : > { %1051 = vst.msk [vmem:[%s254_s9] sm:$0xff] %vm302_vm0, %v1050_v9 }
 0x55d   : > { %1502 = shalt.err (!%p1499_p9)
}
 0x55e   : > { %s1503_s14 = scalar_lea.hbm %s1064_s23, 128  ;;  %s1507_s29 = scalar_lea.hbm %s1865_s4, 256 }
 0x55f   : > { %p1504_p13 = scmp.ne.s32.totalorder %s1064_s23, %s1503_s14  ;;  %p1508_p11 = scmp.lt.s32.totalorder %s1064_s23, %s1865_s4 }
 0x560   : > { %p1509_p1 = scmp.lt.s32.totalorder %s1507_s29, %s1503_s14 }
 0x561   : > { %p1505_p10 = pnand %p1504_p13, %p1883_p6 }
 0x562   : > { %p1510_p2 = por %p1509_p1, %p1508_p11 }
 0x563   : > { %p1506_p8 = pneg %p1505_p10 }
 0x565   : > { %p1511_p4 = pnand %p1510_p2, %p1506_p8 }
 0x567   : > { %1514 = shalt.err (!%p1511_p4)
}
 0x568   : > { %1276 = dma.vmem_to_hbm [thread:$0]  (%p1883_p6), %s1067_s24, 128, %s1064_s23, %s1053_s10  }
 0x569 PF: > { %s1078_s26 = sand.u32 1, %s1549_s15   ;;  %p1884_p12 = scmp.ne.s32.totalorder %s1871_s22, 0 }
 0x56a   : > { %p1885_p0 = scmp.ge.s32.totalorder %s1561_s18, 2  ;;  %s1079_s8 = scalar_lea.sflag [#allocation4], %s1078_s26 }
 0x56c   : > { %p1293_p5 = pnand %p1885_p0, %p1884_p12 }
 0x56e   : > { %p1294_p3 = pneg %p1293_p5 }
 0x570   : > { %1544 = dma.done.wait (%p1294_p3), %s1079_s8, 128  }
 0x571   : > { %1546 = vsyncadd (%p1294_p3), %s1079_s8, 4294967168  ;;  %p19_p7 = scmp.ge.s32.totalorder %s1691_s27, 4   ;;  %s1886_s15 = smov %s1553_s16 }
 0x572   : > { %s1887_s16 = smov %s1557_s17  ;;  %s1888_s17 = smov %s1701_s5 }
 0x573   : > { %s1889_s18 = smov %s1691_s27  ;;  %21 = sbr.rel (!%p19_p7) target bundleno = 7 (0x7), region = 93 }
 0x578   :  { %1084 = vsyncpa [#allocation3], 1 }
 0x579   :  { %1086 = vsyncpa [#allocation3 + $0x1], 1 }
 0x57a   :  { %1087 = vsyncpa [#allocation6], 1 }
 0x57b   :  { %1088 = vsyncpa [#allocation9], 1 }
 0x57c   :  { %1089 = vsyncpa [#allocation4], 1 }
 0x57d   :  { %1091 = vsyncpa [#allocation4 + $0x1], 1 }

</bundles_post_ra>
